<compile_context>
chip_gen: v6e
topology: v6e:2x2x1
jax: 0.10.0
libtpu: 0.0.40
codegen_flags: <defaults>
</compile_context>

<pallas_src>
import jax
import jax.numpy as jnp
from jax.experimental import pallas as pl
from jax.experimental.pallas import tpu as pltpu


_LANES = 128
_SUBLANES = 8


def _round_up(x, m):
    return ((x + m - 1) // m) * m


def _cdiv(a, b):
    return (a + b - 1) // b


def _tile_rows(batch, bytes_per_row, target_bytes):
    """Largest multiple-of-8 row tile such that one block is ~<= target_bytes."""
    t = max(_SUBLANES, (target_bytes // max(bytes_per_row, 1)) // _SUBLANES * _SUBLANES)
    t = min(t, 2048)                              # past ~512 rows we're at HBM roofline
    t = min(t, _round_up(batch, _SUBLANES))       # never exceed the (padded) array
    return max(t, _SUBLANES)


def mixmatch_loss(X, U, p, q):
    """X: [Bx, C] logits, U: [Bu, C] logits, p: [Bx] int labels, q: [Bu, C] targets."""
    Bx, C = X.shape
    Bu, Cu = U.shape
    assert Cu == C and q.shape == (Bu, C)

    # int64 upstream labels: this cast/reshape is load-bearing.
    p2d = p.reshape(-1, 1).astype(jnp.int32)

    # --- per-stream tile sizes (class axis kept whole) ---
    tx = _tile_rows(Bx, C * X.dtype.itemsize, target_bytes=1 << 20)
    tu = _tile_rows(Bu, C * (U.dtype.itemsize + q.dtype.itemsize), target_bytes=2 << 20)

    nx = _cdiv(Bx, tx)                            # labeled tiles
    nu = _cdiv(Bu, tu)                            # unlabeled tiles

    # one partition per TensorCore (v7x megacore) unless there is too little work
    num_partitions = 2 if max(nx, nu) >= 2 else 1
    tiles_per_part = _cdiv(max(nx, nu), num_partitions)
    grid = (num_partitions, tiles_per_part)

    # --- zero-pad each stream to its own tile multiple (padding is masked or
    #     contributes exactly zero) ---
    bx_pad = nx * tx
    bu_pad = nu * tu
    Xp = jnp.pad(X, ((0, bx_pad - Bx), (0, 0)))
    pp = jnp.pad(p2d, ((0, bx_pad - Bx), (0, 0)))
    Up = jnp.pad(U, ((0, bu_pad - Bu), (0, 0)))
    qp = jnp.pad(q, ((0, bu_pad - Bu), (0, 0)))

    def kernel(x_ref, p_ref, u_ref, q_ref, out_ref, accx_ref, accu_ref):
        t = pl.program_id(1)
        g = pl.program_id(0) * tiles_per_part + t       # global tile slot

        @pl.when(t == 0)
        def _init():
            accx_ref[...] = jnp.zeros_like(accx_ref)
            accu_ref[...] = jnp.zeros_like(accu_ref)

        # ---- labeled stream: per-row cross-entropy, accumulated in VMEM ----
        @pl.when(g < nx)
        def _xent():
            x = x_ref[...].astype(jnp.float32)                       # [tx, C]
            lbl = p_ref[...]                                         # [tx, 1] int32
            m = jnp.max(x, axis=-1, keepdims=True)
            lse = m + jnp.log(jnp.sum(jnp.exp(x - m), axis=-1, keepdims=True))
            col = jax.lax.broadcasted_iota(jnp.int32, x.shape, 1)
            # NOTE: out-of-range / negative labels silently select 0 here
            # (PyTorch CrossEntropyLoss would raise); valid labels are a
            # precondition.
            true_logit = jnp.sum(jnp.where(col == lbl, x, 0.0),
                                 axis=-1, keepdims=True)
            row = g * tx + jax.lax.broadcasted_iota(jnp.int32, (tx, 1), 0)
            valid = (row < Bx).astype(jnp.float32)
            accx_ref[...] += (lse - true_logit) * valid

        # ---- unlabeled stream: per-row squared error, accumulated in VMEM ----
        @pl.when(g < nu)
        def _mse():
            d = u_ref[...].astype(jnp.float32) - q_ref[...].astype(jnp.float32)
            # padded rows are zero in both u and q -> contribute exactly 0
            accu_ref[...] += jnp.sum(d * d, axis=-1, keepdims=True)

        # ---- finalize: single cross-row reduction + normalization ----
        @pl.when(t == pl.num_programs(1) - 1)
        def _finalize():
            xent = jnp.sum(accx_ref[...]) / jnp.float32(Bx)
            mse = jnp.sum(accu_ref[...]) / jnp.float32(Bu * C)
            out_ref[...] = jnp.full(out_ref.shape, xent + mse, jnp.float32)

    def x_map(c, t):
        # clamp past-the-end slots onto the last real block (same index ->
        # no re-DMA; the pl.when(g < nx) gate skips the compute)
        return (jnp.minimum(c * tiles_per_part + t, nx - 1), 0)

    def u_map(c, t):
        return (jnp.minimum(c * tiles_per_part + t, nu - 1), 0)

    out = pl.pallas_call(
        kernel,
        out_shape=jax.ShapeDtypeStruct(
            (num_partitions, _SUBLANES, _LANES), jnp.float32),
        grid_spec=pltpu.PrefetchScalarGridSpec(
            num_scalar_prefetch=0,
            grid=grid,
            in_specs=[
                pl.BlockSpec((tx, C), x_map),        # X (labeled logits)
                pl.BlockSpec((tx, 1), x_map),        # p (labels)
                pl.BlockSpec((tu, C), u_map),        # U (unlabeled logits)
                pl.BlockSpec((tu, C), u_map),        # q (soft targets)
            ],
            out_specs=pl.BlockSpec((1, _SUBLANES, _LANES), lambda c, t: (c, 0, 0)),
            scratch_shapes=[
                pltpu.VMEM((tx, 1), jnp.float32),    # per-row xent partial sums
                pltpu.VMEM((tu, 1), jnp.float32),    # per-row mse partial sums
            ],
        ),
        compiler_params=pltpu.CompilerParams(
            dimension_semantics=("parallel", "arbitrary"),
            vmem_limit_bytes=32 * 1024 * 1024,
        ),
        cost_estimate=pl.CostEstimate(
            flops=int(5 * Bx * C + 3 * Bu * C),
            transcendentals=int(Bx * (C + 1)),
            bytes_accessed=int(Xp.nbytes + pp.nbytes + Up.nbytes + qp.nbytes
                               + num_partitions * _SUBLANES * _LANES * 4),
        ),
    )(Xp, pp, Up, qp)

    # each partition wrote its (already normalized) partial loss broadcast over a
    # lane-dense block; combine the per-partition partials here.
    return jnp.sum(out[:, 0, 0])


def _reference_loss(X, U, p, q):
    # pure-JAX reference for validation
    logits = X.astype(jnp.float32)
    lse = jax.nn.logsumexp(logits, axis=-1)
    true_logit = jnp.take_along_axis(
        logits, p.reshape(-1, 1).astype(jnp.int32), axis=-1)[:, 0]
    xent = jnp.mean(lse - true_logit)
    mse = jnp.mean((U.astype(jnp.float32) - q.astype(jnp.float32)) ** 2)
    return xent + mse


if __name__ == "__main__":
    key = jax.random.PRNGKey(0)
    k1, k2, k3, k4 = jax.random.split(key, 4)

    # Bu = 2*Bx (typical MixMatch); neither a multiple of 8 -> exercises the
    # padding/masking and separate-tile-size paths.
    Bx, Bu, C = 6, 12, 32
    X = jax.random.normal(k1, (Bx, C), dtype=jnp.float32)          # labeled logits
    U = jax.random.normal(k2, (Bu, C), dtype=jnp.float32)          # unlabeled logits
    p = jax.random.randint(k3, (Bx,), 0, C, dtype=jnp.int32)       # integer labels
    q = jax.nn.softmax(jax.random.normal(k4, (Bu, C)), axis=-1)    # soft targets

    loss = jax.block_until_ready(mixmatch_loss(X, U, p, q))
    ref = jax.block_until_ready(_reference_loss(X, U, p, q))

    assert jnp.allclose(loss, ref, rtol=1e-5, atol=1e-5), (loss, ref)
    print("KERNEL_OK")
</pallas_src>

<mosaic_0001>
module attributes {stable_mosaic.version = 11 : i64} {
  func.func @kernel(%arg0: i32, %arg1: i32, %arg2: memref<8x32xf32, #tpu.memory_space<vmem>>, %arg3: memref<8x1xi32, #tpu.memory_space<vmem>>, %arg4: memref<16x32xf32, #tpu.memory_space<vmem>>, %arg5: memref<16x32xf32, #tpu.memory_space<vmem>>, %arg6: memref<1x8x128xf32, #tpu.memory_space<vmem>>, %arg7: memref<8x1xf32, #tpu.memory_space<vmem>>, %arg8: memref<16x1xf32, #tpu.memory_space<vmem>>) attributes {dimension_semantics = [#tpu.dimension_semantics<parallel>, #tpu.dimension_semantics<arbitrary>], iteration_bounds = array<i64: 1, 1>, scalar_prefetch = 0 : i64, scratch_operands = 2 : i64, tpu.core_type = #tpu.core_type<tc>, window_params = [{transform_indices = @transform_0, window_bounds = array<i64: 8, 32>}, {transform_indices = @transform_1, window_bounds = array<i64: 8, 1>}, {transform_indices = @transform_2, window_bounds = array<i64: 16, 32>}, {transform_indices = @transform_3, window_bounds = array<i64: 16, 32>}, {transform_indices = @transform_4, window_bounds = array<i64: 1, 8, 128>}]} {
    %c1_i32 = arith.constant 1 : i32
    %0 = arith.muli %arg0, %c1_i32 : i32
    %1 = arith.addi %0, %arg1 : i32
    %c0_i32 = arith.constant 0 : i32
    %2 = arith.cmpi eq, %arg1, %c0_i32 : i32
    %3 = arith.extui %2 : i1 to i32
    %c0_i32_0 = arith.constant 0 : i32
    %4 = arith.cmpi ne, %3, %c0_i32_0 : i32
    scf.if %4 {
      %cst = arith.constant 0.000000e+00 : f32
      %14 = vector.broadcast %cst : f32 to vector<8x1xf32>
      %c0 = arith.constant 0 : index
      %c0_7 = arith.constant 0 : index
      %15 = vector.load %arg7[%c0, %c0_7] : memref<8x1xf32, #tpu.memory_space<vmem>>, vector<8x1xf32>
      tpu.vector_store %arg7[%c0, %c0_7], %14 {strides = array<i32>} : memref<8x1xf32, #tpu.memory_space<vmem>>, vector<8x1xf32>,
      %cst_8 = arith.constant 0.000000e+00 : f32
      %16 = vector.broadcast %cst_8 : f32 to vector<16x1xf32>
      %c0_9 = arith.constant 0 : index
      %c0_10 = arith.constant 0 : index
      %17 = vector.load %arg8[%c0_9, %c0_10] : memref<16x1xf32, #tpu.memory_space<vmem>>, vector<16x1xf32>
      tpu.vector_store %arg8[%c0_9, %c0_10], %16 {strides = array<i32>} : memref<16x1xf32, #tpu.memory_space<vmem>>, vector<16x1xf32>,
    } else {
    }
    %c1_i32_1 = arith.constant 1 : i32
    %5 = arith.cmpi slt, %1, %c1_i32_1 : i32
    %6 = arith.extui %5 : i1 to i32
    %c0_i32_2 = arith.constant 0 : i32
    %7 = arith.cmpi ne, %6, %c0_i32_2 : i32
    scf.if %7 {
      %c0 = arith.constant 0 : index
      %c0_7 = arith.constant 0 : index
      %14 = vector.load %arg2[%c0, %c0_7] : memref<8x32xf32, #tpu.memory_space<vmem>>, vector<8x32xf32>
      %c0_8 = arith.constant 0 : index
      %c0_9 = arith.constant 0 : index
      %15 = vector.load %arg3[%c0_8, %c0_9] : memref<8x1xi32, #tpu.memory_space<vmem>>, vector<8x1xi32>
      %cst = arith.constant dense<0xFF800000> : vector<8xf32>
      %16 = vector.multi_reduction <maximumf>, %14, %cst [1] : vector<8x32xf32> to vector<8xf32>
      %17 = vector.shape_cast %16 : vector<8xf32> to vector<8x1xf32>
      %18 = vector.broadcast %17 : vector<8x1xf32> to vector<8x32xf32>
      %19 = arith.subf %14, %18 : vector<8x32xf32>
      %20 = math.exp %19 : vector<8x32xf32>
      %cst_10 = arith.constant dense<0.000000e+00> : vector<8xf32>
      %21 = vector.multi_reduction <add>, %20, %cst_10 [1] : vector<8x32xf32> to vector<8xf32>
      %22 = vector.shape_cast %21 : vector<8xf32> to vector<8x1xf32>
      %23 = math.log %22 : vector<8x1xf32>
      %24 = arith.addf %17, %23 : vector<8x1xf32>
      %25 = tpu.iota {dimensions = array<i32: 1>} : vector<8x32xi32>
      %26 = vector.broadcast %15 : vector<8x1xi32> to vector<8x32xi32>
      %27 = arith.cmpi eq, %25, %26 : vector<8x32xi32>
      %cst_11 = arith.constant 0.000000e+00 : f32
      %28 = vector.broadcast %cst_11 : f32 to vector<8x32xf32>
      %29 = arith.select %27, %14, %28 : vector<8x32xi1>, vector<8x32xf32>
      %cst_12 = arith.constant dense<0.000000e+00> : vector<8xf32>
      %30 = vector.multi_reduction <add>, %29, %cst_12 [1] : vector<8x32xf32> to vector<8xf32>
      %31 = vector.shape_cast %30 : vector<8xf32> to vector<8x1xf32>
      %c8_i32 = arith.constant 8 : i32
      %32 = arith.muli %1, %c8_i32 : i32
      %33 = tpu.iota {dimensions = array<i32: 0>} : vector<8x1xi32>
      %34 = vector.broadcast %32 : i32 to vector<8x1xi32>
      %35 = arith.addi %34, %33 : vector<8x1xi32>
      %c6_i32 = arith.constant 6 : i32
      %36 = vector.broadcast %c6_i32 : i32 to vector<8x1xi32>
      %37 = arith.cmpi slt, %35, %36 : vector<8x1xi32>
      %38 = arith.extui %37 : vector<8x1xi1> to vector<8x1xi32>
      %39 = arith.sitofp %38 : vector<8x1xi32> to vector<8x1xf32>
      %c0_13 = arith.constant 0 : index
      %c0_14 = arith.constant 0 : index
      %40 = vector.load %arg7[%c0_13, %c0_14] : memref<8x1xf32, #tpu.memory_space<vmem>>, vector<8x1xf32>
      %41 = arith.subf %24, %31 : vector<8x1xf32>
      %42 = arith.mulf %41, %39 : vector<8x1xf32>
      %43 = arith.addf %40, %42 : vector<8x1xf32>
      %c0_15 = arith.constant 0 : index
      %c0_16 = arith.constant 0 : index
      %44 = vector.load %arg7[%c0_15, %c0_16] : memref<8x1xf32, #tpu.memory_space<vmem>>, vector<8x1xf32>
      tpu.vector_store %arg7[%c0_15, %c0_16], %43 {strides = array<i32>} : memref<8x1xf32, #tpu.memory_space<vmem>>, vector<8x1xf32>,
    } else {
    }
    %c1_i32_3 = arith.constant 1 : i32
    %8 = arith.cmpi slt, %1, %c1_i32_3 : i32
    %9 = arith.extui %8 : i1 to i32
    %c0_i32_4 = arith.constant 0 : i32
    %10 = arith.cmpi ne, %9, %c0_i32_4 : i32
    scf.if %10 {
      %c0 = arith.constant 0 : index
      %c0_7 = arith.constant 0 : index
      %14 = vector.load %arg4[%c0, %c0_7] : memref<16x32xf32, #tpu.memory_space<vmem>>, vector<16x32xf32>
      %c0_8 = arith.constant 0 : index
      %c0_9 = arith.constant 0 : index
      %15 = vector.load %arg5[%c0_8, %c0_9] : memref<16x32xf32, #tpu.memory_space<vmem>>, vector<16x32xf32>
      %16 = arith.subf %14, %15 : vector<16x32xf32>
      %c0_10 = arith.constant 0 : index
      %c0_11 = arith.constant 0 : index
      %17 = vector.load %arg8[%c0_10, %c0_11] : memref<16x1xf32, #tpu.memory_space<vmem>>, vector<16x1xf32>
      %18 = arith.mulf %16, %16 : vector<16x32xf32>
      %cst = arith.constant dense<0.000000e+00> : vector<16xf32>
      %19 = vector.multi_reduction <add>, %18, %cst [1] : vector<16x32xf32> to vector<16xf32>
      %20 = vector.shape_cast %19 : vector<16xf32> to vector<16x1xf32>
      %21 = arith.addf %17, %20 : vector<16x1xf32>
      %c0_12 = arith.constant 0 : index
      %c0_13 = arith.constant 0 : index
      %22 = vector.load %arg8[%c0_12, %c0_13] : memref<16x1xf32, #tpu.memory_space<vmem>>, vector<16x1xf32>
      tpu.vector_store %arg8[%c0_12, %c0_13], %21 {strides = array<i32>} : memref<16x1xf32, #tpu.memory_space<vmem>>, vector<16x1xf32>,
    } else {
    }
    %c0_i32_5 = arith.constant 0 : i32
    %11 = arith.cmpi eq, %arg1, %c0_i32_5 : i32
    %12 = arith.extui %11 : i1 to i32
    %c0_i32_6 = arith.constant 0 : i32
    %13 = arith.cmpi ne, %12, %c0_i32_6 : i32
    scf.if %13 {
      %c0 = arith.constant 0 : index
      %c0_7 = arith.constant 0 : index
      %14 = vector.load %arg7[%c0, %c0_7] : memref<8x1xf32, #tpu.memory_space<vmem>>, vector<8x1xf32>
      %15 = vector.shape_cast %14 : vector<8x1xf32> to vector<1x8x1xf32>
      %cst = arith.constant dense<0.000000e+00> : vector<1xf32>
      %16 = vector.multi_reduction <add>, %15, %cst [1, 2] : vector<1x8x1xf32> to vector<1xf32>
      %17 = vector.shape_cast %16 : vector<1xf32> to vector<1x1x1xf32>
      %18 = vector.extract %17[0, 0, 0] : f32 from vector<1x1x1xf32>
      %cst_8 = arith.constant 6.000000e+00 : f32
      %19 = arith.divf %18, %cst_8 : f32
      %c0_9 = arith.constant 0 : index
      %c0_10 = arith.constant 0 : index
      %20 = vector.load %arg8[%c0_9, %c0_10] : memref<16x1xf32, #tpu.memory_space<vmem>>, vector<16x1xf32>
      %21 = vector.shape_cast %20 : vector<16x1xf32> to vector<1x16x1xf32>
      %cst_11 = arith.constant dense<0.000000e+00> : vector<1xf32>
      %22 = vector.multi_reduction <add>, %21, %cst_11 [1, 2] : vector<1x16x1xf32> to vector<1xf32>
      %23 = vector.shape_cast %22 : vector<1xf32> to vector<1x1x1xf32>
      %24 = vector.extract %23[0, 0, 0] : f32 from vector<1x1x1xf32>
      %cst_12 = arith.constant 3.840000e+02 : f32
      %25 = arith.divf %24, %cst_12 : f32
      %26 = arith.addf %19, %25 : f32
      %27 = vector.broadcast %26 : f32 to vector<1x8x128xf32>
      %c0_13 = arith.constant 0 : index
      %c0_14 = arith.constant 0 : index
      %c0_15 = arith.constant 0 : index
      %28 = vector.load %arg6[%c0_13, %c0_14, %c0_15] : memref<1x8x128xf32, #tpu.memory_space<vmem>>, vector<1x8x128xf32>
      tpu.vector_store %arg6[%c0_13, %c0_14, %c0_15], %27 {strides = array<i32>} : memref<1x8x128xf32, #tpu.memory_space<vmem>>, vector<1x8x128xf32>,
    } else {
    }
    return
  }
  func.func @transform_0(%arg0: i32, %arg1: i32) -> (i32, i32) {
    %c1_i32 = arith.constant 1 : i32
    %0 = arith.muli %arg0, %c1_i32 : i32
    %1 = arith.addi %0, %arg1 : i32
    %c0_i32 = arith.constant 0 : i32
    %2 = arith.minsi %1, %c0_i32 : i32
    %c0_i32_0 = arith.constant 0 : i32
    %c0_i32_1 = arith.constant 0 : i32
    return %2, %c0_i32_0 : i32, i32
  }
  func.func @transform_1(%arg0: i32, %arg1: i32) -> (i32, i32) {
    %c1_i32 = arith.constant 1 : i32
    %0 = arith.muli %arg0, %c1_i32 : i32
    %1 = arith.addi %0, %arg1 : i32
    %c0_i32 = arith.constant 0 : i32
    %2 = arith.minsi %1, %c0_i32 : i32
    %c0_i32_0 = arith.constant 0 : i32
    %c0_i32_1 = arith.constant 0 : i32
    return %2, %c0_i32_0 : i32, i32
  }
  func.func @transform_2(%arg0: i32, %arg1: i32) -> (i32, i32) {
    %c1_i32 = arith.constant 1 : i32
    %0 = arith.muli %arg0, %c1_i32 : i32
    %1 = arith.addi %0, %arg1 : i32
    %c0_i32 = arith.constant 0 : i32
    %2 = arith.minsi %1, %c0_i32 : i32
    %c0_i32_0 = arith.constant 0 : i32
    %c0_i32_1 = arith.constant 0 : i32
    return %2, %c0_i32_0 : i32, i32
  }
  func.func @transform_3(%arg0: i32, %arg1: i32) -> (i32, i32) {
    %c1_i32 = arith.constant 1 : i32
    %0 = arith.muli %arg0, %c1_i32 : i32
    %1 = arith.addi %0, %arg1 : i32
    %c0_i32 = arith.constant 0 : i32
    %2 = arith.minsi %1, %c0_i32 : i32
    %c0_i32_0 = arith.constant 0 : i32
    %c0_i32_1 = arith.constant 0 : i32
    return %2, %c0_i32_0 : i32, i32
  }
  func.func @transform_4(%arg0: i32, %arg1: i32) -> (i32, i32, i32) {
    %c0_i32 = arith.constant 0 : i32
    %c0_i32_0 = arith.constant 0 : i32
    %c0_i32_1 = arith.constant 0 : i32
    return %arg0, %c0_i32, %c0_i32_0 : i32, i32, i32
  }
}

</mosaic_0001>

<bundles_post_ra>
// kernel: tpu_custom_call.1
= control target key start
LH: loop header
LB: loop body
LE: loop exit
PB: predicated region body
PF: predicated region fallthrough
CT: control target
= control target key end

     0   :  { %9 = vsyncpa [#allocation5], 0  ;;  %s406_s0 = inlined_call_operand.vmem [shape: f32[8,32], index: 0, kind: input, shape index: {}]   ;;  %s407_s1 = inlined_call_operand.vmem [shape: s32[8,1], index: 1, kind: input, shape index: {}]   ;;  %s408_s2 = inlined_call_operand.hbm [shape: f32[16,32], index: 2, kind: input, shape index: {}]   ;;  %s409_s3 = inlined_call_operand.hbm [shape: f32[16,32], index: 3, kind: input, shape index: {}]   ;;  %s410_s4 = inlined_call_operand.hbm [shape: f32[1,8,128], index: 4, kind: output, shape index: {}]  }
   0x1   :  { %10 = vsyncpa [#allocation8], 0 }
   0x2   :  { %11 = vsyncpa [#allocation6], 0  ;;  %s345_s15 = smov [#allocation4]  }
   0x3   :  { %s47_s16 = sshll.u32 %s345_s15, 4  ;;  %s48_s16 = int_to_ptr.vmem [resolvable:$true] %s47_s16 }
   0x4   :  { %s287_s17 = scalar_lea.vmem %s48_s16, 256  ;;  %p292_p1 = scmp.lt.s32.totalorder %s48_s16, %s48_s16 }
   0x5   :  { %p288_p0 = scmp.ne.s32.totalorder %s48_s16, %s287_s17  ;;  %p293_p2 = scmp.lt.s32.totalorder %s287_s17, %s287_s17 }
   0x7   :  { %p294_p3 = por %p293_p2, %p292_p1 }
   0x9   :  { %p295_p4 = pnand %p294_p3, %p288_p0 }
   0xb   :  { %298 = shalt.err (!%p295_p4)
}
   0xc   :  { %s346_s18 = smov 128   ;;  %s347_s19 = smov 8  }
   0xd   :  { %53 = dma.hbm_to_vmem [thread:$0]  %s408_s2, 256, %s48_s16, [#allocation5], %s346_s18, %s346_s18, %s347_s19  }
   0xe   :  { %s348_s22 = smov [#allocation7]  }
   0xf   :  { %s65_s23 = sshll.u32 %s348_s22, 4  ;;  %s66_s23 = int_to_ptr.vmem [resolvable:$true] %s65_s23 }
  0x10   :  { %s307_s24 = scalar_lea.vmem %s66_s23, 256  ;;  %p312_p6 = scmp.lt.s32.totalorder %s66_s23, %s66_s23 }
  0x11   :  { %p308_p5 = scmp.ne.s32.totalorder %s66_s23, %s307_s24  ;;  %p313_p7 = scmp.lt.s32.totalorder %s307_s24, %s307_s24 }
  0x13   :  { %p314_p8 = por %p313_p7, %p312_p6 }
  0x15   :  { %p315_p9 = pnand %p314_p8, %p308_p5 }
  0x17   :  { %318 = shalt.err (!%p315_p9)
}
  0x18   :  { %71 = dma.hbm_to_vmem [thread:$0]  %s409_s3, 256, %s66_s23, [#allocation8], %s346_s18, %s346_s18, %s347_s19  }
  0x19   :  { %339 = dma.done.wait [#allocation5], 256  }
  0x1a   :  { %340 = vsyncadd [#allocation5], 4294967040 }
  0x1b   :  { %341 = dma.done.wait [#allocation8], 256  }
  0x1c   :  { %342 = vsyncadd [#allocation8], 4294967040  ;;  %v349_v0 = vmov 0   ;;  %vm135_vm0 = vcmask 261120   ;;  %v133_v1 = vld [vmem:[%s406_s0] sm:$0xff]  ;;  %v148_v7 = vlaneseq  ;;  %v172_v10 = vld [vmem:[#allocation4] sm:$0xff] }
  0x1d   :  { %274 = vset.pattern.permute.xlu0 %v349_v0  ;;  %v136_v2 = vsel %vm135_vm0, %v133_v1, -inf  ;;  %v134_v3 = vld [vmem:[%s407_s1] sm:$0xff]  ;;  %v174_v11 = vld [vmem:[#allocation7] sm:$0xff]  ;;  %v175_v16 = vld [vmem:[#allocation7 + $0x8] sm:$0xff]  ;;  %vm125_vm2 = vcmask 7168   ;;  %v350_v24 = vmov 0.0  }
  0x1e   :  { %137 = vmax.xlane.f32.xlu0 %v136_v2  ;;  %v149_v8 = vand.u32 127, %v148_v7  ;;  %v176_v12 = vsub.f32 %v172_v10, %v174_v11  ;;  %v173_v15 = vld [vmem:[#allocation4 + $0x8] sm:$0xff]  ;;  %126 = vst.msk [vmem:[#allocation2] sm:$0xff] %vm125_vm2, %v350_v24  ;;  %127 = vst.msk [vmem:[#allocation3] sm:$0xff] %vm125_vm2, %v350_v24  ;;  %v160_v31 = vshrl.u32 %v148_v7, 7  ;;  %s351_s5 = smov [#allocation9]  }
  0x1f   :  { %v177_v20 = vsub.f32 %v173_v15, %v175_v16  ;;  %128 = vst.msk [vmem:[#allocation3 + $0x8] sm:$0xff] %vm125_vm2, %v350_v24  ;;  %s236_s6 = sshll.u32 %s351_s5, 4  ;;  %s237_s6 = int_to_ptr.vmem [resolvable:$true] %s236_s6 }
  0x20   :  { %v180_v19 = vmul.f32 %v176_v12, %v176_v12  ;;  %vm163_vm3 = vcmp.lt.s32.totalorder %v160_v31, 6  ;;  %s319_s8 = scalar_lea.vmem %s237_s6, 128  ;;  %p324_p11 = scmp.lt.s32.totalorder %s237_s6, %s237_s6 }
  0x21   :  { %v181_v22 = vmul.f32 %v177_v20, %v177_v20  ;;  %v262_v37 = vsel %vm163_vm3, 1.0, %v350_v24  ;;  %p320_p10 = scmp.ne.s32.totalorder %s237_s6, %s319_s8  ;;  %p325_p12 = scmp.lt.s32.totalorder %s319_s8, %s319_s8 }
  0x22   :  { %v182_v21 = vsel %vm135_vm0, %v180_v19, 0.0 }
  0x23   :  { %v185_v23 = vsel %vm135_vm0, %v181_v22, 0.0  ;;  %p326_p13 = por %p325_p12, %p324_p11 }
  0x25   :  { %v178_v27 = vld [vmem:[#allocation3] sm:$0xff]  ;;  %v166_v39 = vld [vmem:[#allocation2] sm:$0xff]  ;;  %p327_p0 = pnand %p326_p13, %p320_p10 }
  0x26   :  { %v179_v30 = vld [vmem:[#allocation3 + $0x8] sm:$0xff] }
  0x34   :  { %151 = vperm.xlu0 %274, %v134_v3  }
  0xa7   :  { %v138_v4 = vpop.xlane.xlu0 %137 }
  0xa8   :  { %v139_v5 = vsub.f32 %v133_v1, %v138_v4 }
  0xaa   :  { %v140_v6 = vmul.f32 1.442695, %v139_v5 }
  0xac   :  { %275 = vpow2.f32 %v140_v6 }
  0xaf   :  { %v152_v9 = vpop.permute.xlu0 %151 }
  0xb0   :  { %vm153_vm1 = vcmp.eq.s32.totalorder %v149_v8, %v152_v9 }
  0xb1   :  { %v154_v14 = vsel %vm153_vm1, %v133_v1, 0.0 }
  0xb2   :  { %v155_v18 = vsel %vm135_vm0, %v154_v14, 0.0 }
  0xb9   :  { %v276_v13 = vpop.eup %275 }
  0xba   :  { %v142_v17 = vsel %vm135_vm0, %v276_v13, 0.0 }
  0xbb   :  { %143 = vadd.xlane.f32.xlu1 %v142_v17 }
  0xbf   :  { %156 = vadd.xlane.f32.xlu1 %v155_v18 }
  0xc3   :  { %183 = vadd.xlane.f32.xlu1 %v182_v21 }
  0xc7   :  { %186 = vadd.xlane.f32.xlu1 %v185_v23 }
 0x144   :  { %v144_v25 = vpop.xlane.xlu1 %143 }
 0x145   :  { %277 = vlog2.f32 %v144_v25 }
 0x148   :  { %v157_v26 = vpop.xlane.xlu1 %156 }
 0x14c   :  { %v184_v28 = vpop.xlane.xlu1 %183 }
 0x14d   :  { %v188_v29 = vadd.f32 %v184_v28, %v178_v27 }
 0x14f   :  { %190 = vst.msk [vmem:[#allocation3] sm:$0xff] %vm125_vm2, %v188_v29 }
 0x150   :  { %v187_v32 = vpop.xlane.xlu1 %186 }
 0x151   :  { %v189_v33 = vadd.f32 %v187_v32, %v179_v30 }
 0x152   :  { %v278_v34 = vpop.eup %277 }
 0x153   :  { %v146_v35 = vmul.f32 0.6931472, %v278_v34  ;;  %191 = vst.msk [vmem:[#allocation3 + $0x8] sm:$0xff] %vm125_vm2, %v189_v33 }
 0x155   :  { %v147_v36 = vadd.f32 %v146_v35, %v138_v4 }
 0x156   :  { %v210_v42 = vld [vmem:[#allocation3] sm:$0xff] }
 0x157   :  { %v167_v38 = vsub.f32 %v147_v36, %v157_v26  ;;  %v212_v46 = vsel %vm125_vm2, %v210_v42, 0.0 }
 0x159   :  { %v168_v40 = vmul.f32 %v262_v37, %v167_v38 }
 0x15a   :  { %v211_v43 = vld [vmem:[#allocation3 + $0x8] sm:$0xff] }
 0x15b   :  { %v169_v41 = vadd.f32 %v168_v40, %v166_v39  ;;  %v213_v47 = vsel %vm125_vm2, %v211_v43, 0.0 }
 0x15c   :  { %v214_v48 = vadd.f32 %v213_v47, %v212_v46 }
 0x15d   :  { %171 = vst.msk [vmem:[#allocation2] sm:$0xff] %vm125_vm2, %v169_v41 }
 0x164   :  { %v195_v44 = vld [vmem:[#allocation2] sm:$0xff] }
 0x165   :  { %v197_v45 = vsel %vm125_vm2, %v195_v44, 0.0 }
 0x166   :  { %198 = vadd.xlane.f32.xlu1 %v197_v45 }
 0x16a   :  { %215 = vadd.xlane.f32.xlu1 %v214_v48 }
 0x1ef   :  { %v199_v49 = vpop.xlane.xlu1 %198 }
 0x1f0   :  { %v200_v50 = vrot.slane %v199_v49, 4 }
 0x1f2   :  { %v201_v51 = vadd.f32 %v200_v50, %v199_v49 }
 0x1f3   :  { %v216_v52 = vpop.xlane.xlu1 %215 }
 0x1f4   :  { %v202_v53 = vrot.slane %v201_v51, 2  ;;  %v217_v54 = vrot.slane %v216_v52, 4 }
 0x1f6   :  { %v218_v55 = vadd.f32 %v217_v54, %v216_v52  ;;  %v203_v56 = vadd.f32 %v202_v53, %v201_v51 }
 0x1f8   :  { %v219_v57 = vrot.slane %v218_v55, 2  ;;  %v204_v58 = vrot.slane %v203_v56, 1 }
 0x1fa   :  { %v220_v59 = vadd.f32 %v219_v57, %v218_v55  ;;  %v205_v60 = vadd.f32 %v204_v58, %v203_v56 }
 0x1fc   :  { %263 = vpush %v205_v60  ;;  %v221_v61 = vrot.slane %v220_v59, 1 }
 0x1fe   :  { %v222_v62 = vadd.f32 %v221_v61, %v220_v59 }
 0x200   :  { %265 = vpush %v222_v62 }
 0x22d   :  { %s264_s0 = spop %263 }
 0x22e   :  { %s209_s1 = smul.f32 0.16666667, %s264_s0 }
 0x231   :  { %s266_s3 = spop %265 }
 0x232   :  { %s226_s30 = smul.f32 0.0026041667, %s266_s3 }
 0x234   :  { %s227_s7 = sadd.f32 %s226_s30, %s209_s1 }
 0x236   :  { %v228_v63 = vstv %s227_s7 }
 0x237   :  { %229 = vst [vmem:[#allocation9] sm:$0xff] %v228_v63 }
 0x238   :  { %330 = shalt.err (!%p327_p0)
}
 0x239   :  { %239 = dma.vmem_to_hbm [thread:$0]  %s237_s6, 128, %s410_s4, [#allocation6]  }
 0x23a   :  { %343 = dma.done.wait [#allocation6], 128  }
 0x23b   :  { %344 = vsyncadd [#allocation6], 4294967168 }
 0x23c   :  { %243 = vsyncpa [#allocation5], 1 }
 0x23d   :  { %244 = vsyncpa [#allocation8], 1 }
 0x23e   :  { %245 = vsyncpa [#allocation6], 1 }

</bundles_post_ra>
